<compile_context>
chip_gen: v7x
topology: tpu7x:2x2x1
jax: 0.10.0
libtpu: 0.0.40
codegen_flags: <defaults>
</compile_context>

<pallas_src>
import functools

import jax
import jax.numpy as jnp
from jax.experimental import pallas as pl
from jax.experimental.pallas import tpu as pltpu

BN_EPS = 1e-5


def _round_up(a, b):
    return (a + b - 1) // b * b


def _vmem_budget_bytes():
    """Per-core VMEM budget (generation aware, with headroom)."""
    phys = 64 << 20
    try:
        info = pltpu.get_tpu_info()
        phys = int(getattr(info, "vmem_capacity_bytes", phys))
    except Exception:
        pass
    # ~3/4 of physical, capped: ~96 MiB on 128 MiB parts (v5e/v6e),
    # ~48 MiB on 64 MiB parts (v7x).
    return max(32 << 20, min(phys * 3 // 4, 96 << 20))


def _factorized_reduce_kernel(x_ref, w_ref, gamma_ref, beta_ref, o_ref,
                              sum_ref, sumsq_ref, *rest,
                              cache_y, inv_m, num_tiles):
    phase = pl.program_id(0)
    n = pl.program_id(1)
    t = pl.program_id(2)
    first = jnp.logical_and(n == 0, t == 0)

    @pl.when(phase == 0)
    def _():
        @pl.when(first)
        def _():
            sum_ref[...] = jnp.zeros_like(sum_ref)
            sumsq_ref[...] = jnp.zeros_like(sumsq_ref)
        # Fused 1x1 convs for both paths (block-diagonal weight == channel
        # concat): (C_out, 2*C_in) @ (2*C_in, TM) on the MXU, f32 accumulate.
        y = jnp.dot(w_ref[...], x_ref[...], preferred_element_type=jnp.float32)
        # Single-pass BN statistics (f32); zero-padded columns contribute 0.
        sum_ref[...] += jnp.sum(y, axis=1, keepdims=True)
        sumsq_ref[...] += jnp.sum(y * y, axis=1, keepdims=True)
        if cache_y:
            rest[0][n * num_tiles + t] = y

    @pl.when(phase == 1)
    def _():
        @pl.when(first)
        def _():
            # Hoisted BN scale/shift: computed once, reused for every tile
            # (scratch is reused: sum_ref <- scale, sumsq_ref <- shift).
            mean = sum_ref[...] * inv_m
            var = sumsq_ref[...] * inv_m - mean * mean      # biased variance
            scale = gamma_ref[...] * jax.lax.rsqrt(var + BN_EPS)
            sumsq_ref[...] = beta_ref[...] - mean * scale   # -> shift
            sum_ref[...] = scale                            # -> scale
        if cache_y:
            y = rest[0][n * num_tiles + t]
        else:
            y = jnp.dot(w_ref[...], x_ref[...],
                        preferred_element_type=jnp.float32)
        o_ref[...] = (y * sum_ref[...] + sumsq_ref[...]).astype(o_ref.dtype)


@jax.jit
def factorized_reduce(x, w1, w2, gamma, beta):
    """x: (N, C_in, H, W) NCHW. Returns (N, C_out, ceil(H/2), ceil(W/2))."""
    N, C_in, H, W = x.shape
    c_half = w1.shape[1]
    c_out = 2 * c_half
    c2 = 2 * C_in

    # AvgPool2d(kernel=1, stride=2, pad=0) == strided subsample.
    x1 = x[:, :, ::2, ::2]
    if H % 2 == 0 and W % 2 == 0:
        x2 = x[:, :, 1::2, 1::2]          # no pad round-trip for even dims
    else:
        xp = jnp.pad(x, ((0, 0), (0, 0), (0, 1), (0, 1)))[:, :, 1:, 1:]
        x2 = xp[:, :, ::2, ::2]
    Ho, Wo = x1.shape[2], x1.shape[3]
    m = Ho * Wo                           # per-image column count

    # Keep the native (N, C, Ho*Wo) layout: no input transpose and the final
    # NCHW view of the output is a free reshape.  BN stats are accumulated
    # across the batch grid axis inside the kernel.  XLA fuses the strided
    # slices + concat + reshape into a single copy under jit.
    xk = jnp.concatenate([x1, x2], axis=1).reshape(N, c2, m)

    itemsize = x.dtype.itemsize
    budget = _vmem_budget_bytes()

    # --- Tile sizing: target ~1 MiB X blocks (lane-dense, multiple of 128),
    #     capped so double-buffered in/out blocks stay within budget. ---
    per_col_pipe = 2 * c2 * itemsize + 2 * c_out * itemsize
    tm = (1 << 20) // max(1, c2 * itemsize)
    tm = min(tm, (budget // 4) // max(1, per_col_pipe))
    tm = max(128, tm // 128 * 128)
    if m <= tm:
        tm, m_pad, num_tiles = m, m, 1    # full-extent block, no padding
    else:
        m_pad = _round_up(m, tm)
        num_tiles = m_pad // tm
    if m_pad != m:
        xk = jnp.pad(xk, ((0, 0), (0, 0), (0, m_pad - m)))

    # --- y-cache: avoid the phase-1 HBM re-read / re-matmul when it fits. ---
    pipe_bytes = tm * per_col_pipe + (c_out * c2 + 4 * c_out) * 4
    y_cache_bytes = N * num_tiles * c_out * tm * 4
    cache_y = (y_cache_bytes + pipe_bytes + (4 << 20)) <= budget

    # Block-diagonal, transposed conv weight: Wt @ [x1; x2] == concat of convs.
    z = jnp.zeros((c_half, C_in), w1.dtype)
    wt = jnp.concatenate(
        [jnp.concatenate([w1.T, z], axis=1),
         jnp.concatenate([z, w2.T], axis=1)], axis=0)       # (C_out, 2*C_in)
    # NOTE: casting xk/wt to bfloat16 here would halve HBM traffic on v6e/v7x;
    # kept in f32 to stay numerically faithful to the PyTorch f32 conv.

    gamma2 = gamma.reshape(c_out, 1).astype(jnp.float32)
    beta2 = beta.reshape(c_out, 1).astype(jnp.float32)

    kernel = functools.partial(_factorized_reduce_kernel,
                               cache_y=cache_y, inv_m=1.0 / (N * m),
                               num_tiles=num_tiles)

    n_passes = 1 if cache_y else 2
    cost = pl.CostEstimate(
        flops=n_passes * 2 * N * m_pad * c2 * c_out + 4 * N * m_pad * c_out,
        transcendentals=c_out,
        bytes_accessed=(n_passes * xk.size * itemsize
                        + N * m_pad * c_out * itemsize
                        + wt.size * wt.dtype.itemsize + 4 * c_out * 4))

    if cache_y:
        # Phase 1 never needs X: park the index on block (0,0,0).
        x_map = lambda p, nb, tb: ((1 - p) * nb, 0, (1 - p) * tb)
    else:
        x_map = lambda p, nb, tb: (nb, 0, tb)

    scratch = [pltpu.VMEM((c_out, 1), jnp.float32),
               pltpu.VMEM((c_out, 1), jnp.float32)]
    if cache_y:
        scratch.append(pltpu.VMEM((N * num_tiles, c_out, tm), jnp.float32))

    out = pl.pallas_call(
        kernel,
        out_shape=jax.ShapeDtypeStruct((N, c_out, m_pad), x.dtype),
        grid_spec=pltpu.PrefetchScalarGridSpec(
            num_scalar_prefetch=0,
            grid=(2, N, num_tiles),                # (phase, batch, M tiles)
            in_specs=[
                pl.BlockSpec((pl.Squeezed(), c2, tm), x_map),
                pl.BlockSpec((c_out, c2), lambda p, nb, tb: (0, 0)),
                pl.BlockSpec((c_out, 1), lambda p, nb, tb: (0, 0)),
                pl.BlockSpec((c_out, 1), lambda p, nb, tb: (0, 0)),
            ],
            # Phase 0 never writes o_ref: all phase-0 steps map onto block
            # (0,0,0), which phase-1 (n=0,t=0) fully overwrites before the
            # first block-index change, so no un-normalized data is ever
            # written back to HBM and each block gets exactly one writeback.
            out_specs=pl.BlockSpec((pl.Squeezed(), c_out, tm),
                                   lambda p, nb, tb: (p * nb, 0, p * tb)),
            scratch_shapes=scratch),
        compiler_params=pltpu.CompilerParams(
            dimension_semantics=("arbitrary", "arbitrary", "arbitrary"),
            vmem_limit_bytes=budget),
        cost_estimate=cost,
    )(xk, wt, gamma2, beta2)

    # (N, C_out, m_pad) -> NCHW: slice off padding, free reshape, no transpose.
    return out[:, :, :m].reshape(N, c_out, Ho, Wo)


def init_ws_identity_params(key, c_in, c_out, stride, affine=True):
    """Two FactorizedReduce branches: two 1x1 conv weights + BN affine each."""
    if stride != 2:
        return None
    assert c_out % 2 == 0
    c_half = c_out // 2
    params = []
    for _ in range(2):
        key, k1, k2 = jax.random.split(key, 3)
        w1 = 0.1 * jax.random.normal(k1, (c_in, c_half), jnp.float32)
        w2 = 0.1 * jax.random.normal(k2, (c_in, c_half), jnp.float32)
        gamma = jnp.ones((c_out,), jnp.float32)   # affine init: weight=1
        beta = jnp.zeros((c_out,), jnp.float32)   # affine init: bias=0
        params.append((w1, w2, gamma, beta))
    return params


def ws_identity_forward(x, x_id, params, stride=1, bn_train=False):
    """WSIdentity.forward.  x_id selects which FactorizedReduce branch."""
    if stride == 2:
        w1, w2, gamma, beta = params[x_id]
        return factorized_reduce(x, w1, w2, gamma, beta)
    return x


def _reference_factorized_reduce(x, w1, w2, gamma, beta):
    """Pure-JAX reference of FactorizedReduce (training-mode BN)."""
    H, W = x.shape[2], x.shape[3]
    x1 = x[:, :, ::2, ::2]
    if H % 2 == 0 and W % 2 == 0:
        x2 = x[:, :, 1::2, 1::2]
    else:
        xp = jnp.pad(x, ((0, 0), (0, 0), (0, 1), (0, 1)))[:, :, 1:, 1:]
        x2 = xp[:, :, ::2, ::2]
    y1 = jnp.einsum('nchw,ck->nkhw', x1, w1)
    y2 = jnp.einsum('nchw,ck->nkhw', x2, w2)
    y = jnp.concatenate([y1, y2], axis=1)
    mean = jnp.mean(y, axis=(0, 2, 3), keepdims=True)
    var = jnp.mean((y - mean) ** 2, axis=(0, 2, 3), keepdims=True)
    y_hat = (y - mean) * jax.lax.rsqrt(var + BN_EPS)
    return y_hat * gamma.reshape(1, -1, 1, 1) + beta.reshape(1, -1, 1, 1)


if __name__ == "__main__":
    key = jax.random.PRNGKey(0)
    k_x, k_p = jax.random.split(key)

    N, C_IN, H, W = 2, 4, 16, 16
    C_OUT = 8
    x = jax.random.normal(k_x, (N, C_IN, H, W), jnp.float32)

    params = init_ws_identity_params(k_p, C_IN, C_OUT, stride=2)

    # stride == 2 path (both branches) -> Pallas kernel.
    for x_id in range(2):
        out = ws_identity_forward(x, x_id=x_id, params=params, stride=2)
        out = jax.block_until_ready(out)
        assert out.shape == (N, C_OUT, H // 2, W // 2)
        ref = _reference_factorized_reduce(x, *params[x_id])
        err = float(jnp.max(jnp.abs(out - ref)))
        assert jnp.allclose(out, ref, rtol=2e-2, atol=2e-2), err

    # stride == 1 path -> identity.
    out_id = ws_identity_forward(x, x_id=0, params=params, stride=1)
    jax.block_until_ready(out_id)
    assert out_id.shape == x.shape

    print("KERNEL_OK")
</pallas_src>

<mosaic_0001>
module attributes {stable_mosaic.version = 11 : i64} {
  func.func @_factorized_reduce_kernel(%arg0: i32, %arg1: i32, %arg2: i32, %arg3: memref<1x8x64xf32, #tpu.memory_space<vmem>>, %arg4: memref<8x8xf32, #tpu.memory_space<vmem>>, %arg5: memref<8x1xf32, #tpu.memory_space<vmem>>, %arg6: memref<8x1xf32, #tpu.memory_space<vmem>>, %arg7: memref<1x8x64xf32, #tpu.memory_space<vmem>>, %arg8: memref<8x1xf32, #tpu.memory_space<vmem>>, %arg9: memref<8x1xf32, #tpu.memory_space<vmem>>, %arg10: memref<2x8x64xf32, #tpu.memory_space<vmem>>) attributes {dimension_semantics = [#tpu.dimension_semantics<arbitrary>, #tpu.dimension_semantics<arbitrary>, #tpu.dimension_semantics<arbitrary>], iteration_bounds = array<i64: 2, 2, 1>, scalar_prefetch = 0 : i64, scratch_operands = 3 : i64, tpu.core_type = #tpu.core_type<tc>, window_params = [{transform_indices = @transform_0, window_bounds = array<i64: 1, 8, 64>}, {pipeline_mode = #tpu.pipeline_mode<synchronous>, transform_indices = @transform_1, window_bounds = array<i64: 8, 8>}, {pipeline_mode = #tpu.pipeline_mode<synchronous>, transform_indices = @transform_2, window_bounds = array<i64: 8, 1>}, {pipeline_mode = #tpu.pipeline_mode<synchronous>, transform_indices = @transform_3, window_bounds = array<i64: 8, 1>}, {transform_indices = @transform_4, window_bounds = array<i64: 1, 8, 64>}]} {
    %c0_i32 = arith.constant 0 : i32
    %0 = arith.cmpi eq, %arg1, %c0_i32 : i32
    %c0_i32_0 = arith.constant 0 : i32
    %1 = arith.cmpi eq, %arg2, %c0_i32_0 : i32
    %2 = arith.andi %0, %1 : i1
    %c0_i32_1 = arith.constant 0 : i32
    %3 = arith.cmpi eq, %arg0, %c0_i32_1 : i32
    %4 = arith.extui %3 : i1 to i32
    %c0_i32_2 = arith.constant 0 : i32
    %5 = arith.cmpi ne, %4, %c0_i32_2 : i32
    scf.if %5 {
      %9 = arith.extui %2 : i1 to i32
      %c0_i32_4 = arith.constant 0 : i32
      %10 = arith.cmpi ne, %9, %c0_i32_4 : i32
      scf.if %10 {
        %cst_22 = arith.constant 0.000000e+00 : f32
        %32 = vector.broadcast %cst_22 : f32 to vector<8x1xf32>
        %c0_23 = arith.constant 0 : index
        %c0_24 = arith.constant 0 : index
        %33 = vector.load %arg8[%c0_23, %c0_24] : memref<8x1xf32, #tpu.memory_space<vmem>>, vector<8x1xf32>
        tpu.vector_store %arg8[%c0_23, %c0_24], %32 {strides = array<i32>} : memref<8x1xf32, #tpu.memory_space<vmem>>, vector<8x1xf32>,
        %cst_25 = arith.constant 0.000000e+00 : f32
        %34 = vector.broadcast %cst_25 : f32 to vector<8x1xf32>
        %c0_26 = arith.constant 0 : index
        %c0_27 = arith.constant 0 : index
        %35 = vector.load %arg9[%c0_26, %c0_27] : memref<8x1xf32, #tpu.memory_space<vmem>>, vector<8x1xf32>
        tpu.vector_store %arg9[%c0_26, %c0_27], %34 {strides = array<i32>} : memref<8x1xf32, #tpu.memory_space<vmem>>, vector<8x1xf32>,
      } else {
      }
      %c0 = arith.constant 0 : index
      %c0_5 = arith.constant 0 : index
      %11 = vector.load %arg4[%c0, %c0_5] : memref<8x8xf32, #tpu.memory_space<vmem>>, vector<8x8xf32>
      %c0_6 = arith.constant 0 : index
      %c0_7 = arith.constant 0 : index
      %c0_8 = arith.constant 0 : index
      %12 = vector.load %arg3[%c0_6, %c0_7, %c0_8] : memref<1x8x64xf32, #tpu.memory_space<vmem>>, vector<1x8x64xf32>
      %13 = vector.shape_cast %12 : vector<1x8x64xf32> to vector<8x64xf32>
      %cst = arith.constant dense<0.000000e+00> : vector<8x64xf32>
      %14 = tpu.matmul %11, %13, %cst {dimension_numbers = #tpu.dot_dimension_numbers<[1], [0], [0], [1], [0, 0, 1, 1], [], []>} : vector<8x8xf32>, vector<8x64xf32>, vector<8x64xf32> -> vector<8x64xf32>
      %c0_9 = arith.constant 0 : index
      %c0_10 = arith.constant 0 : index
      %15 = vector.load %arg8[%c0_9, %c0_10] : memref<8x1xf32, #tpu.memory_space<vmem>>, vector<8x1xf32>
      %cst_11 = arith.constant dense<0.000000e+00> : vector<8xf32>
      %16 = vector.multi_reduction <add>, %14, %cst_11 [1] : vector<8x64xf32> to vector<8xf32>
      %17 = vector.shape_cast %16 : vector<8xf32> to vector<8x1xf32>
      %18 = arith.addf %15, %17 : vector<8x1xf32>
      %c0_12 = arith.constant 0 : index
      %c0_13 = arith.constant 0 : index
      %19 = vector.load %arg8[%c0_12, %c0_13] : memref<8x1xf32, #tpu.memory_space<vmem>>, vector<8x1xf32>
      tpu.vector_store %arg8[%c0_12, %c0_13], %18 {strides = array<i32>} : memref<8x1xf32, #tpu.memory_space<vmem>>, vector<8x1xf32>,
      %c0_14 = arith.constant 0 : index
      %c0_15 = arith.constant 0 : index
      %20 = vector.load %arg9[%c0_14, %c0_15] : memref<8x1xf32, #tpu.memory_space<vmem>>, vector<8x1xf32>
      %21 = arith.mulf %14, %14 : vector<8x64xf32>
      %cst_16 = arith.constant dense<0.000000e+00> : vector<8xf32>
      %22 = vector.multi_reduction <add>, %21, %cst_16 [1] : vector<8x64xf32> to vector<8xf32>
      %23 = vector.shape_cast %22 : vector<8xf32> to vector<8x1xf32>
      %24 = arith.addf %20, %23 : vector<8x1xf32>
      %c0_17 = arith.constant 0 : index
      %c0_18 = arith.constant 0 : index
      %25 = vector.load %arg9[%c0_17, %c0_18] : memref<8x1xf32, #tpu.memory_space<vmem>>, vector<8x1xf32>
      tpu.vector_store %arg9[%c0_17, %c0_18], %24 {strides = array<i32>} : memref<8x1xf32, #tpu.memory_space<vmem>>, vector<8x1xf32>,
      %c1_i32_19 = arith.constant 1 : i32
      %26 = arith.muli %arg1, %c1_i32_19 : i32
      %27 = arith.addi %26, %arg2 : i32
      %28 = arith.index_cast %27 : i32 to index
      %c0_20 = arith.constant 0 : index
      %c0_21 = arith.constant 0 : index
      %29 = vector.load %arg10[%28, %c0_20, %c0_21] : memref<2x8x64xf32, #tpu.memory_space<vmem>>, vector<1x8x64xf32>
      %30 = vector.shape_cast %29 : vector<1x8x64xf32> to vector<8x64xf32>
      %31 = vector.shape_cast %14 : vector<8x64xf32> to vector<1x8x64xf32>
      tpu.vector_store %arg10[%28, %c0_20, %c0_21], %31 {strides = array<i32>} : memref<2x8x64xf32, #tpu.memory_space<vmem>>, vector<1x8x64xf32>,
    } else {
    }
    %c1_i32 = arith.constant 1 : i32
    %6 = arith.cmpi eq, %arg0, %c1_i32 : i32
    %7 = arith.extui %6 : i1 to i32
    %c0_i32_3 = arith.constant 0 : i32
    %8 = arith.cmpi ne, %7, %c0_i32_3 : i32
    scf.if %8 {
      %9 = arith.extui %2 : i1 to i32
      %c0_i32_4 = arith.constant 0 : i32
      %10 = arith.cmpi ne, %9, %c0_i32_4 : i32
      scf.if %10 {
        %c0_14 = arith.constant 0 : index
        %c0_15 = arith.constant 0 : index
        %25 = vector.load %arg8[%c0_14, %c0_15] : memref<8x1xf32, #tpu.memory_space<vmem>>, vector<8x1xf32>
        %cst = arith.constant 7.812500e-03 : f32
        %26 = vector.broadcast %cst : f32 to vector<8x1xf32>
        %27 = arith.mulf %25, %26 : vector<8x1xf32>
        %c0_16 = arith.constant 0 : index
        %c0_17 = arith.constant 0 : index
        %28 = vector.load %arg9[%c0_16, %c0_17] : memref<8x1xf32, #tpu.memory_space<vmem>>, vector<8x1xf32>
        %cst_18 = arith.constant 7.812500e-03 : f32
        %29 = vector.broadcast %cst_18 : f32 to vector<8x1xf32>
        %30 = arith.mulf %28, %29 : vector<8x1xf32>
        %31 = arith.mulf %27, %27 : vector<8x1xf32>
        %32 = arith.subf %30, %31 : vector<8x1xf32>
        %c0_19 = arith.constant 0 : index
        %c0_20 = arith.constant 0 : index
        %33 = vector.load %arg5[%c0_19, %c0_20] : memref<8x1xf32, #tpu.memory_space<vmem>>, vector<8x1xf32>
        %cst_21 = arith.constant 9.99999974E-6 : f32
        %34 = vector.broadcast %cst_21 : f32 to vector<8x1xf32>
        %35 = arith.addf %32, %34 : vector<8x1xf32>
        %36 = math.rsqrt %35 : vector<8x1xf32>
        %37 = arith.mulf %33, %36 : vector<8x1xf32>
        %c0_22 = arith.constant 0 : index
        %c0_23 = arith.constant 0 : index
        %38 = vector.load %arg6[%c0_22, %c0_23] : memref<8x1xf32, #tpu.memory_space<vmem>>, vector<8x1xf32>
        %39 = arith.mulf %27, %37 : vector<8x1xf32>
        %40 = arith.subf %38, %39 : vector<8x1xf32>
        %c0_24 = arith.constant 0 : index
        %c0_25 = arith.constant 0 : index
        %41 = vector.load %arg9[%c0_24, %c0_25] : memref<8x1xf32, #tpu.memory_space<vmem>>, vector<8x1xf32>
        tpu.vector_store %arg9[%c0_24, %c0_25], %40 {strides = array<i32>} : memref<8x1xf32, #tpu.memory_space<vmem>>, vector<8x1xf32>,
        %c0_26 = arith.constant 0 : index
        %c0_27 = arith.constant 0 : index
        %42 = vector.load %arg8[%c0_26, %c0_27] : memref<8x1xf32, #tpu.memory_space<vmem>>, vector<8x1xf32>
        tpu.vector_store %arg8[%c0_26, %c0_27], %37 {strides = array<i32>} : memref<8x1xf32, #tpu.memory_space<vmem>>, vector<8x1xf32>,
      } else {
      }
      %c1_i32_5 = arith.constant 1 : i32
      %11 = arith.muli %arg1, %c1_i32_5 : i32
      %12 = arith.addi %11, %arg2 : i32
      %13 = arith.index_cast %12 : i32 to index
      %c0 = arith.constant 0 : index
      %c0_6 = arith.constant 0 : index
      %14 = vector.load %arg10[%13, %c0, %c0_6] : memref<2x8x64xf32, #tpu.memory_space<vmem>>, vector<1x8x64xf32>
      %15 = vector.shape_cast %14 : vector<1x8x64xf32> to vector<8x64xf32>
      %c0_7 = arith.constant 0 : index
      %c0_8 = arith.constant 0 : index
      %16 = vector.load %arg8[%c0_7, %c0_8] : memref<8x1xf32, #tpu.memory_space<vmem>>, vector<8x1xf32>
      %17 = vector.broadcast %16 : vector<8x1xf32> to vector<8x64xf32>
      %18 = arith.mulf %15, %17 : vector<8x64xf32>
      %c0_9 = arith.constant 0 : index
      %c0_10 = arith.constant 0 : index
      %19 = vector.load %arg9[%c0_9, %c0_10] : memref<8x1xf32, #tpu.memory_space<vmem>>, vector<8x1xf32>
      %20 = vector.broadcast %19 : vector<8x1xf32> to vector<8x64xf32>
      %21 = arith.addf %18, %20 : vector<8x64xf32>
      %c0_11 = arith.constant 0 : index
      %c0_12 = arith.constant 0 : index
      %c0_13 = arith.constant 0 : index
      %22 = vector.load %arg7[%c0_11, %c0_12, %c0_13] : memref<1x8x64xf32, #tpu.memory_space<vmem>>, vector<1x8x64xf32>
      %23 = vector.shape_cast %22 : vector<1x8x64xf32> to vector<8x64xf32>
      %24 = vector.shape_cast %21 : vector<8x64xf32> to vector<1x8x64xf32>
      tpu.vector_store %arg7[%c0_11, %c0_12, %c0_13], %24 {strides = array<i32>} : memref<1x8x64xf32, #tpu.memory_space<vmem>>, vector<1x8x64xf32>,
    } else {
    }
    return
  }
  func.func @transform_0(%arg0: i32, %arg1: i32, %arg2: i32) -> (i32, i32, i32) {
    %c1_i32 = arith.constant 1 : i32
    %0 = arith.subi %c1_i32, %arg0 : i32
    %1 = arith.muli %0, %arg1 : i32
    %c1_i32_0 = arith.constant 1 : i32
    %2 = arith.subi %c1_i32_0, %arg0 : i32
    %3 = arith.muli %2, %arg2 : i32
    %c0_i32 = arith.constant 0 : i32
    %c0_i32_1 = arith.constant 0 : i32
    return %1, %c0_i32, %3 : i32, i32, i32
  }
  func.func @transform_1(%arg0: i32, %arg1: i32, %arg2: i32) -> (i32, i32) {
    %c0_i32 = arith.constant 0 : i32
    %c0_i32_0 = arith.constant 0 : i32
    %c0_i32_1 = arith.constant 0 : i32
    return %c0_i32, %c0_i32_0 : i32, i32
  }
  func.func @transform_2(%arg0: i32, %arg1: i32, %arg2: i32) -> (i32, i32) {
    %c0_i32 = arith.constant 0 : i32
    %c0_i32_0 = arith.constant 0 : i32
    %c0_i32_1 = arith.constant 0 : i32
    return %c0_i32, %c0_i32_0 : i32, i32
  }
  func.func @transform_3(%arg0: i32, %arg1: i32, %arg2: i32) -> (i32, i32) {
    %c0_i32 = arith.constant 0 : i32
    %c0_i32_0 = arith.constant 0 : i32
    %c0_i32_1 = arith.constant 0 : i32
    return %c0_i32, %c0_i32_0 : i32, i32
  }
  func.func @transform_4(%arg0: i32, %arg1: i32, %arg2: i32) -> (i32, i32, i32) {
    %0 = arith.muli %arg0, %arg1 : i32
    %1 = arith.muli %arg0, %arg2 : i32
    %c0_i32 = arith.constant 0 : i32
    %c0_i32_0 = arith.constant 0 : i32
    return %0, %c0_i32, %1 : i32, i32, i32
  }
}

</mosaic_0001>

<bundles_post_ra>
// kernel: factorized_reduce.1
= control target key start
LH: loop header
LB: loop body
LE: loop exit
PB: predicated region body
PF: predicated region fallthrough
CT: control target
= control target key end

     0   :  { %s644_s15 = smov 0   ;;  %s646_s16 = smov 0   ;;  %s724_s0 = inlined_call_operand.vmem [shape: f32[2,8,64], index: 0, kind: input, shape index: {}]   ;;  %s725_s1 = inlined_call_operand.vmem [shape: f32[8,8], index: 1, kind: input, shape index: {}]   ;;  %s726_s2 = inlined_call_operand.vmem [shape: f32[8,1], index: 2, kind: input, shape index: {}]   ;;  %s727_s3 = inlined_call_operand.vmem [shape: f32[8,1], index: 3, kind: input, shape index: {}]   ;;  %s728_s4 = inlined_call_operand.vmem [shape: f32[2,8,64], index: 4, kind: output, shape index: {}]  }
   0x1   :  { %s648_s17 = smov 0   ;;  %s650_s18 = smov 0  }
   0x2   :  { %s652_s19 = smov 0  }
   0x3 LB: > { %s29_s20 = sadd.s32 1, %s605_s17  ;;  %s33_s21 = sadd.s32 1, %s609_s18  ;;  %s613_s19 = sphi %s652_s19, %s14_s19   ;;  %s609_s18 = sphi %s650_s18, %s732_s18   ;;  %s605_s17 = sphi %s648_s17, %s731_s17   ;;  %s601_s16 = sphi %s646_s16, %s730_s16   ;;  %s597_s15 = sphi %s644_s15, %s729_s15  }
   0x4   : > { %p31_p0 = scmp.ge.s32.totalorder %s29_s20, 2  ;;  %p509_p1 = scmp.ge.s32.totalorder %s613_s19, 1 }
   0x5   : > { %p203_p2 = scmp.lt.s32.totalorder %s613_s19, 5 }
   0x6   : > { %s734_s20 = smov (%p31_p0, %s29_s20), 0  ;;  %s736_s21 = smov (!%p31_p0, %s33_s21), %s609_s18 }
   0x7   : > { %p204_p3 = pnand %p509_p1, %p203_p2  ;;  %p35_p4 = scmp.ge.s32.totalorder %s736_s21, 2 }
   0x8   : > { %s238_s22 = ssub.s32 (!%p204_p3), 1, %s601_s16  ;;  %s251_s23 = smul.u32 (!%p204_p3), %s597_s15, %s601_s16 }
   0x9   : > { %s738_s21 = smov (%p35_p4, %s736_s21), 0  ;;  %207 = sbr.rel (%p204_p3) target bundleno = 572 (0x23c), region = 36 }
   0xa   : > { %s239_s24 = smul.u32 (!%p204_p3), %s597_s15, %s238_s22  ;;  %p262_p5 = scmp.eq.s32.totalorder (!%p204_p3), %s597_s15, 0 }
   0xb   : > { %p253_p6 = scmp.lt.s32.totalorder (!%p204_p3), %s251_s23, 1  ;;  %p513_p8 = scmp.ne.s32.totalorder (!%p204_p3), %s601_s16, 0 }
   0xc   : > { %p241_p7 = scmp.lt.s32.totalorder (!%p204_p3), %s239_s24, 1 }
  0x10   : > { %s740_s23 = smov (!%p253_p6, %s251_s23), 1  ;;  %s742_s24 = smov (!%p241_p7, %s239_s24), 1 }
  0x11   : > { %s511_s25 = sshll.u32 %s740_s23, 3  ;;  %s510_s26 = sshll.u32 %s742_s24, 3 }
  0x12   : > { %s686_s29 = scalar_lea.vmem %s728_s4, %s511_s25  ;;  %s247_s6 = scalar_lea.vmem %s724_s0, %s510_s26 }
  0x13   : > { %269 = sbr.rel (%p513_p8) target bundleno = 398 (0x18e), region = 40 }
  0x1a   : > { %271 = sbr.rel (!%p262_p5) target bundleno = 33 (0x21), region = 44  ;;  %vm272_vm0 = vcmask (%p262_p5), 7168   ;;  %v615_v0 = vmov (%p262_p5), 0.0  }
  0x1b   : > { %273 = vst.msk [vmem:[#allocation2] sm:$0xff] (%p262_p5), %vm272_vm0, %v615_v0  ;;  %274 = vst.msk [vmem:[#allocation3] sm:$0xff] (%p262_p5), %vm272_vm0, %v615_v0 }
  0x21 PF: > { %v276_v1 = vld [vmem:[%s247_s6] sm:$0xff]  ;;  %vm277_vm1 = vcmask 64512   ;;  %v616_v3 = vmov 0.0   ;;  %vm617_vm2 = vmmov 0   ;;  %s515_s9 = sshll.u32 %s597_s15, 3  ;;  %vm352_vm3 = vcmask 523264  }
  0x22   : > { %v275_v2 = vld [vmem:[%s725_s1] sm:$0xff]  ;;  %523 = vmatprep.subr.mxu0 %v616_v3  ;;  %525 = vmatprep.mubr.msk.f32.mxu0 %vm617_vm2, %v616_v3  ;;  %s368_s10 = scalar_lea.vmem [#allocation4], %s515_s9  ;;  %vm357_vm4 = vcmask 7168   ;;  %v359_v12 = vld [vmem:[#allocation3] sm:$0xff] }
  0x23   : > { %524 = vmatpush3.msra.mxu0 %v276_v1  ;;  %v351_v9 = vld [vmem:[#allocation2] sm:$0xff] }
  0x24   : > { %526 = vmatmul.mubr.msk.f32.vlgmr.msra.gmra.mrb[0].mxu0 %vm277_vm1, %v275_v2 }
  0xf7   : > { %v347_v4 = vpop.f32.mrb[0].mxu0 }
  0xf8   : > { %v527_v5 = vpop.f32.mrb[1].mxu0  ;;  %v353_v6 = vsel %vm352_vm3, %v347_v4, 0.0  ;;  %369 = vst.msk [vmem:[%s368_s10] sm:$0xff] %vm352_vm3, %v347_v4  ;;  %v360_v7 = vmul.f32 %v347_v4, %v347_v4 }
  0xf9   : > { %354 = vadd.xlane.f32.xlu0 %v353_v6 }
  0xfa   : > { %v361_v8 = vsel %vm352_vm3, %v360_v7, 0.0 }
  0xfd   : > { %362 = vadd.xlane.f32.xlu0 %v361_v8 }
 0x186   : > { %v355_v10 = vpop.xlane.xlu0 %354 }
 0x187   : > { %v356_v11 = vadd.f32 %v355_v10, %v351_v9 }
 0x189   : > { %358 = vst.msk [vmem:[#allocation2] sm:$0xff] %vm357_vm4, %v356_v11 }
 0x18a   : > { %v363_v13 = vpop.xlane.xlu0 %362 }
 0x18b   : > { %v364_v14 = vadd.f32 %v363_v13, %v359_v12 }
 0x18d   : > { %365 = vst.msk [vmem:[#allocation3] sm:$0xff] %vm357_vm4, %v364_v14 }
 0x18e PF: > { %p516_p9 = scmp.ne.s32.totalorder %s601_s16, 1 }
 0x190   : > { %373 = sbr.rel (%p516_p9) target bundleno = 572 (0x23c), region = 48 }
 0x197   : > { %375 = sbr.rel (!%p262_p5) target bundleno = 434 (0x1b2), region = 52  ;;  %v376_v15 = vld [vmem:[#allocation2] sm:$0xff] (%p262_p5)  ;;  %v378_v16 = vld [vmem:[#allocation3] sm:$0xff] (%p262_p5)  ;;  %vm389_vm5 = vcmask (%p262_p5), 7168  }
 0x198   : > { %v377_v17 = vmul.f32 (%p262_p5), 0.0078125, %v376_v15  ;;  %v379_v18 = vmul.f32 (%p262_p5), 0.0078125, %v378_v16  ;;  %v382_v22 = vld [vmem:[%s726_s2] sm:$0xff] (%p262_p5) }
 0x199   : > { %v386_v25 = vld [vmem:[%s727_s3] sm:$0xff] (%p262_p5) }
 0x19a   : > { %v380_v19 = vmul.f32 (%p262_p5), %v377_v17, %v377_v17 }
 0x19c   : > { %v381_v20 = vsub.f32 (%p262_p5), %v379_v18, %v380_v19 }
 0x19e   : > { %v383_v21 = vadd.f32 1e-05, %v381_v20 }
 0x1a0   : > { %572 = vrsqrt.f32 %v383_v21 }
 0x1aa   : > { %v573_v23 = vpop.eup %572 }
 0x1ab   : > { %v385_v24 = vmul.f32 %v573_v23, %v382_v22 }
 0x1ad   : > { %v387_v26 = vmul.f32 %v385_v24, %v377_v17  ;;  %391 = vst.msk [vmem:[#allocation2] sm:$0xff] %vm389_vm5, %v385_v24 }
 0x1af   : > { %v388_v27 = vsub.f32 %v386_v25, %v387_v26 }
 0x1b1   : > { %390 = vst.msk [vmem:[#allocation3] sm:$0xff] %vm389_vm5, %v388_v27 }
 0x1b2 PF: > { %v618_v29 = vmov 0   ;;  %s517_s16 = sshll.u32 %s597_s15, 3  ;;  %vm410_vm6 = vcmask 523264  }
 0x1b3   : > { %574 = vset.pattern.permute.xlu0 %v618_v29  ;;  %s394_s22 = scalar_lea.vmem [#allocation4], %s517_s16 }
 0x1b4   : > { %v396_v28 = vld [vmem:[#allocation2] sm:$0xff] }
 0x1b5   : > { %399 = vperm.xlu0 %574, %v396_v28   ;;  %v395_v32 = vld [vmem:[%s394_s22] sm:$0xff] }
 0x1b8   : > { %v403_v30 = vld [vmem:[#allocation3] sm:$0xff] }
 0x1b9   : > { %406 = vperm.xlu0 %574, %v403_v30  }
 0x234   : > { %v400_v31 = vpop.permute.xlu0 %399 }
 0x235   : > { %v402_v33 = vmul.f32 %v400_v31, %v395_v32 }
 0x238   : > { %v407_v34 = vpop.permute.xlu0 %406 }
 0x239   : > { %v409_v35 = vadd.f32 %v407_v34, %v402_v33 }
 0x23b   : > { %411 = vst.msk [vmem:[%s686_s29] sm:$0xff] %vm410_vm6, %v409_v35 }
 0x23c PF: > { %s14_s19 = sadd.s32 1, %s613_s19   ;;  %s729_s15 = smov %s605_s17 }
 0x23d   : > { %p11_p10 = scmp.ge.s32.totalorder %s14_s19, 6   ;;  %s730_s16 = smov %s609_s18 }
 0x23e   : > { %s731_s17 = smov %s734_s20  ;;  %s732_s18 = smov %s738_s21 }
 0x23f   :  { %13 = sbr.rel (!%p11_p10) target bundleno = 3 (0x3), region = 84 }

</bundles_post_ra>
